<compile_context>
chip_gen: v5e
topology: v5e:2x2
jax: 0.10.0
libtpu: 0.0.40
codegen_flags: <defaults>
</compile_context>

<pallas_src>
import functools

import jax
import jax.numpy as jnp
from jax.experimental import pallas as pl
from jax.experimental.pallas import tpu as pltpu


def _round_up(x, m):
    return ((x + m - 1) // m) * m


# ----------------------------- Pallas kernels ------------------------------ #

def _matmul_bias_act_kernel(x_ref, w_ref, b_ref, o_ref, acc_ref, *, relu):
    # grid = (M tiles, N tiles, K tiles); K (reduction) is the last axis.
    @pl.when(pl.program_id(2) == 0)
    def _():
        acc_ref[...] = jnp.zeros_like(acc_ref)

    acc_ref[...] += jnp.dot(x_ref[...], w_ref[...],
                            preferred_element_type=jnp.float32)

    @pl.when(pl.program_id(2) == pl.num_programs(2) - 1)
    def _():
        z = acc_ref[...] + b_ref[...]
        if relu:
            z = jnp.maximum(z, 0.0)
        o_ref[...] = z.astype(o_ref.dtype)


def _fc_log_softmax_kernel(x_ref, w_ref, b_ref, o_ref, acc_ref):
    # grid = (M tiles, K tiles); class dim stays untiled (needed for the
    # row-wise max / log-sum-exp).
    @pl.when(pl.program_id(1) == 0)
    def _():
        acc_ref[...] = jnp.zeros_like(acc_ref)

    acc_ref[...] += jnp.dot(x_ref[...], w_ref[...],
                            preferred_element_type=jnp.float32)

    @pl.when(pl.program_id(1) == pl.num_programs(1) - 1)
    def _():
        z = acc_ref[...] + b_ref[...]      # padded classes carry bias -1e30
        m = jnp.max(z, axis=-1, keepdims=True)
        s = z - m
        lse = jnp.log(jnp.sum(jnp.exp(s), axis=-1, keepdims=True))
        o_ref[...] = s - lse               # log_softmax over dim=1 (f32)


# ------------------------------- Wrappers ----------------------------------- #

# Tile targets sized conservatively: per-step VMEM (bf16 operands, f32 acc,
# double-buffered) stays ~2 MiB -> fits v5e's 16 MiB scoped default and v7x's
# 64 MiB physical VMEM with large headroom.
_TM, _TN, _TK = 256, 256, 512
_VMEM_LIMIT = 32 * 1024 * 1024


def matmul_bias_act(x, w, b=None, *, relu=False):
    """f32_out = act(x @ w + b) with bf16 MXU operands, tiled + pipelined."""
    m, k = x.shape
    k2, n = w.shape
    assert k == k2
    tm = min(_TM, _round_up(m, 128))
    tn = min(_TN, _round_up(n, 128))
    tk = min(_TK, _round_up(k, 128))
    mp, np_, kp = _round_up(m, tm), _round_up(n, tn), _round_up(k, tk)

    xp = jnp.zeros((mp, kp), jnp.bfloat16).at[:m, :k].set(x.astype(jnp.bfloat16))
    wp = jnp.zeros((kp, np_), jnp.bfloat16).at[:k, :n].set(w.astype(jnp.bfloat16))
    if b is None:
        bp = jnp.zeros((1, np_), jnp.float32)
    else:
        bp = jnp.zeros((1, np_), jnp.float32).at[:, :n].set(
            jnp.reshape(b, (1, n)).astype(jnp.float32))

    grid = (mp // tm, np_ // tn, kp // tk)
    out = pl.pallas_call(
        functools.partial(_matmul_bias_act_kernel, relu=relu),
        out_shape=jax.ShapeDtypeStruct((mp, np_), jnp.float32),
        grid_spec=pltpu.PrefetchScalarGridSpec(
            num_scalar_prefetch=0,
            grid=grid,
            in_specs=[
                pl.BlockSpec((tm, tk), lambda i, j, kk: (i, kk)),
                pl.BlockSpec((tk, tn), lambda i, j, kk: (kk, j)),
                pl.BlockSpec((1, tn), lambda i, j, kk: (0, j)),
            ],
            out_specs=pl.BlockSpec((tm, tn), lambda i, j, kk: (i, j)),
            scratch_shapes=[pltpu.VMEM((tm, tn), jnp.float32)],
        ),
        compiler_params=pltpu.CompilerParams(
            dimension_semantics=("parallel", "parallel", "arbitrary"),
            vmem_limit_bytes=_VMEM_LIMIT,
        ),
    )(xp, wp, bp)
    if mp != m or np_ != n:
        out = out[:m, :n]
    return out


def fc_log_softmax(x, w, b):
    """log_softmax(x @ w + b, axis=1); classes padded to 128 lanes."""
    m, k = x.shape
    k2, c = w.shape
    assert k == k2
    cp = max(128, _round_up(c, 128))
    tm = min(_TM, _round_up(m, 128))
    tk = min(_TK, _round_up(k, 128))
    mp, kp = _round_up(m, tm), _round_up(k, tk)

    xp = jnp.zeros((mp, kp), jnp.bfloat16).at[:m, :k].set(x.astype(jnp.bfloat16))
    wp = jnp.zeros((kp, cp), jnp.bfloat16).at[:k, :c].set(w.astype(jnp.bfloat16))
    # Padded classes get a -1e30 bias so they vanish in the softmax.
    bp = jnp.full((1, cp), -1e30, jnp.float32).at[:, :c].set(
        jnp.reshape(b, (1, c)).astype(jnp.float32))

    grid = (mp // tm, kp // tk)
    out = pl.pallas_call(
        _fc_log_softmax_kernel,
        out_shape=jax.ShapeDtypeStruct((mp, cp), jnp.float32),
        grid_spec=pltpu.PrefetchScalarGridSpec(
            num_scalar_prefetch=0,
            grid=grid,
            in_specs=[
                pl.BlockSpec((tm, tk), lambda i, kk: (i, kk)),
                pl.BlockSpec((tk, cp), lambda i, kk: (kk, 0)),
                pl.BlockSpec((1, cp), lambda i, kk: (0, 0)),
            ],
            out_specs=pl.BlockSpec((tm, cp), lambda i, kk: (i, 0)),
            scratch_shapes=[pltpu.VMEM((tm, cp), jnp.float32)],
        ),
        compiler_params=pltpu.CompilerParams(
            dimension_semantics=("parallel", "arbitrary"),
            vmem_limit_bytes=_VMEM_LIMIT,
        ),
    )(xp, wp, bp)
    return out[:m, :c]


# --------------------------------- Glue ------------------------------------ #

def build_normalized_adjacency(edge_index, num_nodes):
    """Dense D^-1/2 (A + I) D^-1/2, matching PyG gcn_norm (add_self_loops=True).

    Built once per graph (hoisted out of the forward pass).
    """
    # TODO(synk): for large N, replace the dense N x N path with a sparse
    # gather/segment-sum aggregation (scalar-prefetch neighbor offsets).
    src = edge_index[0]
    dst = edge_index[1]
    loop = jnp.arange(num_nodes, dtype=edge_index.dtype)
    src = jnp.concatenate([src, loop])
    dst = jnp.concatenate([dst, loop])
    ones = jnp.ones(src.shape[0], jnp.float32)
    deg = jnp.zeros((num_nodes,), jnp.float32).at[dst].add(ones)
    dinv = jnp.where(deg > 0.0, jax.lax.rsqrt(deg), 0.0)
    norm = dinv[src] * dinv[dst]
    a_hat = jnp.zeros((num_nodes, num_nodes), jnp.float32).at[dst, src].add(norm)
    return a_hat


def init_params(key, in_c, out_c):
    """Deterministic glorot-uniform init for all layer weights, zero biases."""
    dims = [(in_c, 1024), (1024, 512), (512, 128), (128, out_c)]
    names = ["1", "2", "3", "f"]
    params = {}
    for name, (ci, co) in zip(names, dims):
        key, sub = jax.random.split(key)
        limit = (6.0 / (ci + co)) ** 0.5
        params["w" + name] = jax.random.uniform(
            sub, (ci, co), jnp.float32, minval=-limit, maxval=limit)
        params["b" + name] = jnp.zeros((co,), jnp.float32)
    return params


def graph_cnn_forward(params, x, a_hat):
    # Layer 1 (in_c < 1024): aggregate first -> relu((A @ X) @ W1 + b1).
    ax = matmul_bias_act(a_hat, x)
    h = matmul_bias_act(ax, params["w1"], params["b1"], relu=True)
    # F.dropout(x, training=self.training): eval mode -> identity.
    # TODO(synk): training-mode dropout (pltpu.prng_random_bits mask) not wired in.

    # Layer 2 (1024 -> 512): transform first -> relu(A @ (H @ W2) + b2).
    xw = matmul_bias_act(h, params["w2"])
    h = matmul_bias_act(a_hat, xw, params["b2"], relu=True)

    # Layer 3 (512 -> 128).
    xw = matmul_bias_act(h, params["w3"])
    h = matmul_bias_act(a_hat, xw, params["b3"], relu=True)

    # Linear(128 -> out_c) + log_softmax(dim=1).
    return fc_log_softmax(h, params["wf"], params["bf"])


# --------------------------------- Main ------------------------------------ #

if __name__ == "__main__":
    key = jax.random.PRNGKey(0)
    N, IN_C, OUT_C = 16, 32, 8

    k_x, k_p = jax.random.split(key)
    x = jax.random.normal(k_x, (N, IN_C), jnp.float32)

    # Deterministic undirected ring graph: edges (i -> i+1) and (i+1 -> i).
    idx = jnp.arange(N, dtype=jnp.int32)
    nxt = (idx + 1) % N
    edge_index = jnp.stack(
        [jnp.concatenate([idx, nxt]), jnp.concatenate([nxt, idx])], axis=0
    )  # [2, 2N]

    params = init_params(k_p, IN_C, OUT_C)

    # A_hat built once per graph, outside the forward pass.
    a_hat = build_normalized_adjacency(edge_index, N)

    out = graph_cnn_forward(params, x, a_hat)
    out = jax.block_until_ready(out)

    assert out.shape == (N, OUT_C)
    # rows of log_softmax should exp-sum to 1
    row_sums = jnp.sum(jnp.exp(out), axis=1)
    assert bool(jnp.all(jnp.abs(row_sums - 1.0) < 1e-3))

    print("KERNEL_OK")
</pallas_src>

<mosaic_0001>
module attributes {stable_mosaic.version = 11 : i64} {
  func.func @_matmul_bias_act_kernel(%arg0: i32, %arg1: i32, %arg2: i32, %arg3: memref<128x128xbf16, #tpu.memory_space<vmem>>, %arg4: memref<128x128xbf16, #tpu.memory_space<vmem>>, %arg5: memref<1x128xf32, #tpu.memory_space<vmem>>, %arg6: memref<128x128xf32, #tpu.memory_space<vmem>>, %arg7: memref<128x128xf32, #tpu.memory_space<vmem>>) attributes {dimension_semantics = [#tpu.dimension_semantics<parallel>, #tpu.dimension_semantics<parallel>, #tpu.dimension_semantics<arbitrary>], iteration_bounds = array<i64: 1, 1, 1>, scalar_prefetch = 0 : i64, scratch_operands = 1 : i64, tpu.core_type = #tpu.core_type<tc>, window_params = [{transform_indices = @transform_0, window_bounds = array<i64: 128, 128>}, {transform_indices = @transform_1, window_bounds = array<i64: 128, 128>}, {transform_indices = @transform_2, window_bounds = array<i64: 1, 128>}, {transform_indices = @transform_3, window_bounds = array<i64: 128, 128>}]} {
    %c0_i32 = arith.constant 0 : i32
    %0 = arith.cmpi eq, %arg2, %c0_i32 : i32
    %1 = arith.extui %0 : i1 to i32
    %c0_i32_0 = arith.constant 0 : i32
    %2 = arith.cmpi ne, %1, %c0_i32_0 : i32
    scf.if %2 {
      %cst_10 = arith.constant 0.000000e+00 : f32
      %12 = vector.broadcast %cst_10 : f32 to vector<128x128xf32>
      %c0_11 = arith.constant 0 : index
      %c0_12 = arith.constant 0 : index
      %13 = vector.load %arg7[%c0_11, %c0_12] : memref<128x128xf32, #tpu.memory_space<vmem>>, vector<128x128xf32>
      tpu.vector_store %arg7[%c0_11, %c0_12], %12 {strides = array<i32>} : memref<128x128xf32, #tpu.memory_space<vmem>>, vector<128x128xf32>,
    } else {
    }
    %c0 = arith.constant 0 : index
    %c0_1 = arith.constant 0 : index
    %3 = vector.load %arg7[%c0, %c0_1] : memref<128x128xf32, #tpu.memory_space<vmem>>, vector<128x128xf32>
    %c0_2 = arith.constant 0 : index
    %c0_3 = arith.constant 0 : index
    %4 = vector.load %arg3[%c0_2, %c0_3] : memref<128x128xbf16, #tpu.memory_space<vmem>>, vector<128x128xbf16>
    %c0_4 = arith.constant 0 : index
    %c0_5 = arith.constant 0 : index
    %5 = vector.load %arg4[%c0_4, %c0_5] : memref<128x128xbf16, #tpu.memory_space<vmem>>, vector<128x128xbf16>
    %cst = arith.constant dense<0.000000e+00> : vector<128x128xf32>
    %6 = tpu.matmul %4, %5, %cst {dimension_numbers = #tpu.dot_dimension_numbers<[1], [0], [0], [1], [0, 0, 1, 1], [], []>} : vector<128x128xbf16>, vector<128x128xbf16>, vector<128x128xf32> -> vector<128x128xf32>
    %7 = arith.addf %3, %6 : vector<128x128xf32>
    %c0_6 = arith.constant 0 : index
    %c0_7 = arith.constant 0 : index
    %8 = vector.load %arg7[%c0_6, %c0_7] : memref<128x128xf32, #tpu.memory_space<vmem>>, vector<128x128xf32>
    tpu.vector_store %arg7[%c0_6, %c0_7], %7 {strides = array<i32>} : memref<128x128xf32, #tpu.memory_space<vmem>>, vector<128x128xf32>,
    %c0_i32_8 = arith.constant 0 : i32
    %9 = arith.cmpi eq, %arg2, %c0_i32_8 : i32
    %10 = arith.extui %9 : i1 to i32
    %c0_i32_9 = arith.constant 0 : i32
    %11 = arith.cmpi ne, %10, %c0_i32_9 : i32
    scf.if %11 {
      %c0_10 = arith.constant 0 : index
      %c0_11 = arith.constant 0 : index
      %12 = vector.load %arg7[%c0_10, %c0_11] : memref<128x128xf32, #tpu.memory_space<vmem>>, vector<128x128xf32>
      %c0_12 = arith.constant 0 : index
      %c0_13 = arith.constant 0 : index
      %13 = vector.load %arg5[%c0_12, %c0_13] : memref<1x128xf32, #tpu.memory_space<vmem>>, vector<1x128xf32>
      %14 = vector.broadcast %13 : vector<1x128xf32> to vector<128x128xf32>
      %15 = arith.addf %12, %14 : vector<128x128xf32>
      %c0_14 = arith.constant 0 : index
      %c0_15 = arith.constant 0 : index
      %16 = vector.load %arg6[%c0_14, %c0_15] : memref<128x128xf32, #tpu.memory_space<vmem>>, vector<128x128xf32>
      tpu.vector_store %arg6[%c0_14, %c0_15], %15 {strides = array<i32>} : memref<128x128xf32, #tpu.memory_space<vmem>>, vector<128x128xf32>,
    } else {
    }
    return
  }
  func.func @transform_0(%arg0: i32, %arg1: i32, %arg2: i32) -> (i32, i32) {
    %c0_i32 = arith.constant 0 : i32
    return %arg0, %arg2 : i32, i32
  }
  func.func @transform_1(%arg0: i32, %arg1: i32, %arg2: i32) -> (i32, i32) {
    %c0_i32 = arith.constant 0 : i32
    return %arg2, %arg1 : i32, i32
  }
  func.func @transform_2(%arg0: i32, %arg1: i32, %arg2: i32) -> (i32, i32) {
    %c0_i32 = arith.constant 0 : i32
    %c0_i32_0 = arith.constant 0 : i32
    return %c0_i32, %arg1 : i32, i32
  }
  func.func @transform_3(%arg0: i32, %arg1: i32, %arg2: i32) -> (i32, i32) {
    %c0_i32 = arith.constant 0 : i32
    return %arg0, %arg1 : i32, i32
  }
}

</mosaic_0001>

<bundles_post_ra>
// kernel: tpu_custom_call.1
= control target key start
LH: loop header
LB: loop body
LE: loop exit
PB: predicated region body
PF: predicated region fallthrough
CT: control target
= control target key end

     0   :  { %8 = vsyncpa [#allocation4], 0  ;;  %s596_s0 = inlined_call_operand.hbm [shape: bf16[128,128], index: 0, kind: input, shape index: {}]   ;;  %s597_s1 = inlined_call_operand.hbm [shape: bf16[128,128], index: 1, kind: input, shape index: {}]   ;;  %s598_s2 = inlined_call_operand.vmem [shape: f32[1,128], index: 2, kind: input, shape index: {}]   ;;  %s599_s3 = inlined_call_operand.hbm [shape: f32[128,128], index: 3, kind: output, shape index: {}]  }
   0x1   :  { %9 = vsyncpa [#allocation7], 0 }
   0x2   :  { %10 = vsyncpa [#allocation5], 0  ;;  %s15_s14 = sshll.u32 %s596_s0, 4  ;;  %s557_s15 = smov [#allocation3]   ;;  %s16_s14 = int_to_ptr.hbm [resolvable:$true] %s15_s14 }
   0x3   :  { %s17_s16 = sshll.u32 %s557_s15, 4  ;;  %s28_s19 = sshll.u32 %s597_s1, 4  ;;  %s18_s16 = int_to_ptr.vmem [resolvable:$true] %s17_s16  ;;  %s29_s19 = int_to_ptr.hbm [resolvable:$true] %s28_s19 }
   0x4   :  { %s558_s20 = smov 64   ;;  %s559_s21 = smov 4  }
   0x5   :  { %23 = dma.hbm_to_vmem [thread:$0]  %s16_s14, 1024, %s18_s16, [#allocation4], %s558_s20, %s558_s20, %s559_s21  }
   0x6   :  { %s560_s22 = smov [#allocation6]  }
   0x7   :  { %s30_s23 = sshll.u32 %s560_s22, 4  ;;  %s31_s23 = int_to_ptr.vmem [resolvable:$true] %s30_s23 }
   0x8   :  { %36 = dma.hbm_to_vmem [thread:$0]  %s29_s19, 1024, %s31_s23, [#allocation7], %s558_s20, %s558_s20, %s559_s21  }
   0x9   :  { %551 = dma.done.wait [#allocation4], 1024  }
   0xa   :  { %552 = vsyncadd [#allocation4], 4294966272 }
   0xb   :  { %553 = dma.done.wait [#allocation7], 1024  }
   0xc   :  { %554 = vsyncadd [#allocation7], 4294966272  ;;  %v446_v0 = vld [vmem:[#allocation6 + $0x38] sm:$0xff]  ;;  %v445_v1 = vld [vmem:[#allocation6 + $0x30] sm:$0xff]  ;;  %s353_s27 = sshll.u32 %s599_s3, 4  ;;  %s562_s28 = smov 128   ;;  %s354_s27 = int_to_ptr.hbm [resolvable:$true] %s353_s27 }
   0xd   :  { %211 = vmatpush.bf16.msra.mxu0 %v446_v0  ;;  %447 = vmatpush.bf16.msra.mxu1 %v446_v0  ;;  %v444_v2 = vld [vmem:[#allocation6 + $0x28] sm:$0xff]  ;;  %v443_v3 = vld [vmem:[#allocation6 + $0x20] sm:$0xff]  ;;  %v442_v4 = vld [vmem:[#allocation6 + $0x18] sm:$0xff]  ;;  %s563_s29 = smov 8  }
   0xe   :  { %448 = vmatpush.bf16.msra.mxu2 %v446_v0  ;;  %449 = vmatpush.bf16.msra.mxu3 %v446_v0  ;;  %v441_v5 = vld [vmem:[#allocation6 + $0x10] sm:$0xff]  ;;  %v440_v6 = vld [vmem:[#allocation6 + $0x8] sm:$0xff]  ;;  %v439_v7 = vld [vmem:[#allocation6] sm:$0xff] }
   0xf   :  { %v431_v8 = vld [vmem:[#allocation3] sm:$0xff]  ;;  %v433_v9 = vld [vmem:[#allocation3 + $0x10] sm:$0xff]  ;;  %v432_v12 = vld [vmem:[#allocation3 + $0x8] sm:$0xff] }
  0x10   :  { %v435_v10 = vld [vmem:[#allocation3 + $0x20] sm:$0xff]  ;;  %v437_v11 = vld [vmem:[#allocation3 + $0x30] sm:$0xff]  ;;  %v434_v13 = vld [vmem:[#allocation3 + $0x18] sm:$0xff] }
  0x11   :  { %212 = vmatpush.bf16.msra.mxu0 %v445_v1  ;;  %450 = vmatpush.bf16.msra.mxu1 %v445_v1  ;;  %v436_v14 = vld [vmem:[#allocation3 + $0x28] sm:$0xff]  ;;  %v438_v15 = vld [vmem:[#allocation3 + $0x38] sm:$0xff]  ;;  %v478_v16 = vld [vmem:[%s598_s2] ss:$0 sm:$0xff]  ;;  %s561_s2 = smov [#allocation8]  }
  0x12   :  { %451 = vmatpush.bf16.msra.mxu2 %v445_v1  ;;  %452 = vmatpush.bf16.msra.mxu3 %v445_v1  ;;  %s351_s24 = sshll.u32 %s561_s2, 4  ;;  %s352_s24 = int_to_ptr.vmem [resolvable:$true] %s351_s24 }
  0x15   :  { %213 = vmatpush.bf16.msra.mxu0 %v444_v2  ;;  %453 = vmatpush.bf16.msra.mxu1 %v444_v2 }
  0x16   :  { %454 = vmatpush.bf16.msra.mxu2 %v444_v2  ;;  %455 = vmatpush.bf16.msra.mxu3 %v444_v2 }
  0x19   :  { %214 = vmatpush.bf16.msra.mxu0 %v443_v3  ;;  %456 = vmatpush.bf16.msra.mxu1 %v443_v3 }
  0x1a   :  { %457 = vmatpush.bf16.msra.mxu2 %v443_v3  ;;  %458 = vmatpush.bf16.msra.mxu3 %v443_v3 }
  0x1d   :  { %215 = vmatpush.bf16.msra.mxu0 %v442_v4  ;;  %459 = vmatpush.bf16.msra.mxu1 %v442_v4 }
  0x1e   :  { %460 = vmatpush.bf16.msra.mxu2 %v442_v4  ;;  %461 = vmatpush.bf16.msra.mxu3 %v442_v4 }
  0x21   :  { %216 = vmatpush.bf16.msra.mxu0 %v441_v5  ;;  %462 = vmatpush.bf16.msra.mxu1 %v441_v5 }
  0x22   :  { %463 = vmatpush.bf16.msra.mxu2 %v441_v5  ;;  %464 = vmatpush.bf16.msra.mxu3 %v441_v5 }
  0x25   :  { %217 = vmatpush.bf16.msra.mxu0 %v440_v6  ;;  %465 = vmatpush.bf16.msra.mxu1 %v440_v6 }
  0x26   :  { %466 = vmatpush.bf16.msra.mxu2 %v440_v6  ;;  %467 = vmatpush.bf16.msra.mxu3 %v440_v6 }
  0x29   :  { %218 = vmatpush.bf16.msra.mxu0 %v439_v7  ;;  %468 = vmatpush.bf16.msra.mxu1 %v439_v7 }
  0x2a   :  { %469 = vmatpush.bf16.msra.mxu2 %v439_v7  ;;  %470 = vmatpush.bf16.msra.mxu3 %v439_v7 }
  0x2c   :  { %219 = vmatmul.bf16.vlgmr.msra.gmra.mxu0 %v431_v8  ;;  %229 = vmatmul.bf16.vlgmr.msra.gmra.mxu1 %v433_v9 }
  0x2d   :  { %239 = vmatmul.bf16.vlgmr.msra.gmra.mxu2 %v435_v10  ;;  %249 = vmatmul.bf16.vlgmr.msra.gmra.mxu3 %v437_v11 }
  0x3c   :  { %224 = vmatmul.bf16.gmra.mxu0 %v432_v12  ;;  %234 = vmatmul.bf16.gmra.mxu1 %v434_v13 }
  0x3d   :  { %244 = vmatmul.bf16.gmra.mxu2 %v436_v14  ;;  %254 = vmatmul.bf16.gmra.mxu3 %v438_v15 }
  0xa9   :  { %v220_v17 = vpop.f32.mrf.mxu0  ;;  %v230_v18 = vpop.f32.mrf.mxu1 }
  0xaa   :  { %v315_v19 = vadd.f32 %v478_v16, %v220_v17  ;;  %v319_v20 = vadd.f32 %v478_v16, %v230_v18 }
  0xac   :  { %331 = vst [vmem:[#allocation8] sm:$0xff] %v315_v19 }
  0xad   :  { %335 = vst [vmem:[#allocation8 + $0x20] sm:$0xff] %v319_v20 }
  0xb0   :  { %v240_v21 = vpop.f32.mrf.mxu2  ;;  %v250_v22 = vpop.f32.mrf.mxu3 }
  0xb1   :  { %v323_v23 = vadd.f32 %v478_v16, %v240_v21  ;;  %v327_v24 = vadd.f32 %v478_v16, %v250_v22  ;;  %v222_v25 = vpop.f32.mrf.mxu0  ;;  %v232_v26 = vpop.f32.mrf.mxu1 }
  0xb2   :  { %v316_v27 = vadd.f32 %v478_v16, %v222_v25  ;;  %v320_v28 = vadd.f32 %v478_v16, %v232_v26 }
  0xb3   :  { %339 = vst [vmem:[#allocation8 + $0x40] sm:$0xff] %v323_v23 }
  0xb4   :  { %343 = vst [vmem:[#allocation8 + $0x60] sm:$0xff] %v327_v24 }
  0xb5   :  { %332 = vst [vmem:[#allocation8 + $0x8] sm:$0xff] %v316_v27 }
  0xb6   :  { %336 = vst [vmem:[#allocation8 + $0x28] sm:$0xff] %v320_v28 }
  0xb8   :  { %v242_v29 = vpop.f32.mrf.mxu2  ;;  %v252_v30 = vpop.f32.mrf.mxu3 }
  0xb9   :  { %v324_v31 = vadd.f32 %v478_v16, %v242_v29  ;;  %v328_v32 = vadd.f32 %v478_v16, %v252_v30  ;;  %v225_v33 = vpop.f32.mrf.mxu0  ;;  %v235_v34 = vpop.f32.mrf.mxu1 }
  0xba   :  { %v317_v35 = vadd.f32 %v478_v16, %v225_v33  ;;  %v321_v36 = vadd.f32 %v478_v16, %v235_v34 }
  0xbb   :  { %340 = vst [vmem:[#allocation8 + $0x48] sm:$0xff] %v324_v31 }
  0xbc   :  { %344 = vst [vmem:[#allocation8 + $0x68] sm:$0xff] %v328_v32 }
  0xbd   :  { %333 = vst [vmem:[#allocation8 + $0x10] sm:$0xff] %v317_v35 }
  0xbe   :  { %337 = vst [vmem:[#allocation8 + $0x30] sm:$0xff] %v321_v36 }
  0xc0   :  { %v245_v37 = vpop.f32.mrf.mxu2  ;;  %v255_v38 = vpop.f32.mrf.mxu3 }
  0xc1   :  { %v325_v39 = vadd.f32 %v478_v16, %v245_v37  ;;  %v329_v40 = vadd.f32 %v478_v16, %v255_v38  ;;  %v227_v41 = vpop.f32.mrf.mxu0  ;;  %v237_v42 = vpop.f32.mrf.mxu1 }
  0xc2   :  { %v318_v43 = vadd.f32 %v478_v16, %v227_v41  ;;  %v322_v44 = vadd.f32 %v478_v16, %v237_v42 }
  0xc3   :  { %341 = vst [vmem:[#allocation8 + $0x50] sm:$0xff] %v325_v39 }
  0xc4   :  { %345 = vst [vmem:[#allocation8 + $0x70] sm:$0xff] %v329_v40 }
  0xc5   :  { %334 = vst [vmem:[#allocation8 + $0x18] sm:$0xff] %v318_v43 }
  0xc6   :  { %338 = vst [vmem:[#allocation8 + $0x38] sm:$0xff] %v322_v44 }
  0xc8   :  { %v247_v45 = vpop.f32.mrf.mxu2  ;;  %v257_v46 = vpop.f32.mrf.mxu3 }
  0xc9   :  { %v326_v47 = vadd.f32 %v478_v16, %v247_v45  ;;  %v330_v48 = vadd.f32 %v478_v16, %v257_v46 }
  0xcb   :  { %342 = vst [vmem:[#allocation8 + $0x58] sm:$0xff] %v326_v47 }
  0xcc   :  { %346 = vst [vmem:[#allocation8 + $0x78] sm:$0xff] %v330_v48 }
  0xcd   :  { %359 = dma.vmem_to_hbm [thread:$0]  %s352_s24, 2048, %s354_s27, [#allocation5], %s562_s28, %s562_s28, %s563_s29  }
  0xce   :  { %555 = dma.done.wait [#allocation5], 2048  }
  0xcf   :  { %556 = vsyncadd [#allocation5], 4294965248 }
  0xd0   :  { %364 = vsyncpa [#allocation4], 1 }
  0xd1   :  { %365 = vsyncpa [#allocation7], 1 }
  0xd2   :  { %366 = vsyncpa [#allocation5], 1 }

</bundles_post_ra>
